<compile_context>
chip_gen: v6e
topology: v6e:2x2x1
jax: 0.10.0
libtpu: 0.0.40
codegen_flags: <defaults>
</compile_context>

<pallas_src>
import jax
import jax.numpy as jnp
from jax.experimental import pallas as pl
from jax.experimental.pallas import tpu as pltpu

_LANES = 128
_Z_RESIDENT_BUDGET = 8 * 1024 * 1024      # keep z (xw / hz) VMEM-resident below this
_VMEM_LIMIT_CAP = 64 * 1024 * 1024        # v7x physical VMEM per TensorCore


def _round_up(x, m):
    return ((x + m - 1) // m) * m


def _pad2(x, rows, cols):
    return jnp.pad(x, ((0, rows - x.shape[0]), (0, cols - x.shape[1])))


# ---------------------------------------------------------------------------
# Kernels
# ---------------------------------------------------------------------------

def _proj_kernel(x_ref, w_ref, o_ref):
    """o = x @ w   (feature projection, computed once per node row-tile)."""
    o_ref[...] = jnp.dot(x_ref[...], w_ref[...],
                         preferred_element_type=jnp.float32).astype(o_ref.dtype)


def _make_agg_kernel(fuse_head, z_resident, tk):
    """Aggregation over A column tiles (grid axis 1).

    fuse_head=True : o = relu(A @ z + b) @ w  (layer 1 + fused mu|sigma head),
                     f32 VMEM accumulator of width h_pad.
    fuse_head=False: o = A @ z + b            (layer 2), accumulated directly
                     into the f32 output block held across the k axis.
    z_resident=True: z_ref holds the whole [N_pad, zc] operand (fetched once);
                     the k-th row tile is sliced in-kernel.
    """
    def z_tile(z_ref, k):
        if z_resident:
            start = pl.multiple_of(k * tk, tk)
            return z_ref[pl.ds(start, tk), :]
        return z_ref[...]

    if fuse_head:
        def kernel(a_ref, z_ref, b_ref, w_ref, o_ref, acc_ref):
            k = pl.program_id(1)

            @pl.when(k == 0)
            def _():
                acc_ref[...] = jnp.zeros_like(acc_ref)

            acc_ref[...] += jnp.dot(a_ref[...], z_tile(z_ref, k),
                                    preferred_element_type=jnp.float32)

            @pl.when(k == pl.num_programs(1) - 1)
            def _():
                h = jnp.maximum(acc_ref[...] + b_ref[...], 0.0)
                o_ref[...] = jnp.dot(
                    h, w_ref[...], preferred_element_type=jnp.float32
                ).astype(o_ref.dtype)
    else:
        def kernel(a_ref, z_ref, b_ref, o_ref):
            k = pl.program_id(1)

            @pl.when(k == 0)
            def _():
                o_ref[...] = jnp.zeros_like(o_ref)

            o_ref[...] += jnp.dot(a_ref[...], z_tile(z_ref, k),
                                  preferred_element_type=jnp.float32)

            @pl.when(k == pl.num_programs(1) - 1)
            def _():
                o_ref[...] += b_ref[...]

    return kernel


# ---------------------------------------------------------------------------
# pallas_call wrappers
# ---------------------------------------------------------------------------

def _project(x, w, tm, out_dtype):
    n_pad, f_pad = x.shape
    h_pad = w.shape[1]
    return pl.pallas_call(
        _proj_kernel,
        out_shape=jax.ShapeDtypeStruct((n_pad, h_pad), out_dtype),
        grid_spec=pltpu.PrefetchScalarGridSpec(
            num_scalar_prefetch=0,
            grid=(n_pad // tm,),
            in_specs=[pl.BlockSpec((tm, f_pad), lambda i: (i, 0)),
                      pl.BlockSpec((f_pad, h_pad), lambda i: (0, 0))],
            out_specs=pl.BlockSpec((tm, h_pad), lambda i: (i, 0))),
        compiler_params=pltpu.CompilerParams(
            dimension_semantics=("parallel",)),
    )(x, w)


def _aggregate(a, z, bias, w_head, *, tm, tk, out_dtype=jnp.float32):
    """out = relu(A @ z + bias) @ w_head   if w_head is not None
       out = A @ z + bias                  otherwise
    Tiled over (node row tiles, A column tiles)."""
    n_pad = a.shape[0]
    zc = z.shape[1]
    assert n_pad % tm == 0 and n_pad % tk == 0
    fuse_head = w_head is not None
    if not fuse_head:
        out_dtype = jnp.float32          # direct accumulation needs f32 output
    out_c = w_head.shape[1] if fuse_head else zc
    grid = (n_pad // tm, n_pad // tk)

    # Keep the projected features VMEM-resident when they fit the budget so
    # they are not re-streamed from HBM once per A row tile.
    z_resident = n_pad * zc * z.dtype.itemsize <= _Z_RESIDENT_BUDGET
    kernel = _make_agg_kernel(fuse_head, z_resident, tk)

    # Conservative (double-buffered) per-step VMEM estimate -> scoped limit.
    z_rows = n_pad if z_resident else tk
    est = 2 * tm * tk * a.dtype.itemsize            # A stream
    est += 2 * z_rows * zc * z.dtype.itemsize       # z (resident or streamed)
    est += 2 * zc * 4                               # bias
    if fuse_head:
        est += 2 * zc * out_c * 4                   # fused (mu|sigma) weight
        est += tm * zc * 4                          # f32 accumulator scratch
    est += 2 * tm * out_c * 4                       # output block
    vmem_limit = int(min(_VMEM_LIMIT_CAP,
                         max(32 * 1024 * 1024, est + est // 4)))

    def build(single_buffer):
        const_kw = {}
        if single_buffer and hasattr(pl, "Buffered"):
            # Grid-invariant operands: no point double-buffering them.
            const_kw = {"pipeline_mode": pl.Buffered(1)}

        if z_resident:
            z_spec = pl.BlockSpec((n_pad, zc), lambda i, k: (0, 0), **const_kw)
        else:
            z_spec = pl.BlockSpec((tk, zc), lambda i, k: (k, 0))

        in_specs = [pl.BlockSpec((tm, tk), lambda i, k: (i, k)),
                    z_spec,
                    pl.BlockSpec((1, zc), lambda i, k: (0, 0), **const_kw)]
        args = [a, z, bias]
        scratch = []
        if fuse_head:
            in_specs.append(
                pl.BlockSpec((zc, out_c), lambda i, k: (0, 0), **const_kw))
            args.append(w_head)
            scratch.append(pltpu.VMEM((tm, zc), jnp.float32))

        return pl.pallas_call(
            kernel,
            out_shape=jax.ShapeDtypeStruct((n_pad, out_c), out_dtype),
            grid_spec=pltpu.PrefetchScalarGridSpec(
                num_scalar_prefetch=0,
                grid=grid,
                in_specs=in_specs,
                out_specs=pl.BlockSpec((tm, out_c), lambda i, k: (i, 0)),
                scratch_shapes=scratch),
            compiler_params=pltpu.CompilerParams(
                dimension_semantics=("parallel", "arbitrary"),
                vmem_limit_bytes=vmem_limit),
        )(*args)

    try:
        return build(single_buffer=True)
    except Exception:
        # Older Pallas without BlockSpec.pipeline_mode / Buffered(1): fall back
        # to default double-buffering (correct, slightly more VMEM).
        return build(single_buffer=False)


# ---------------------------------------------------------------------------
# Graph preprocessing + forward
# ---------------------------------------------------------------------------

def gcn_normalized_adjacency(edge_index, num_nodes):
    """Dense equivalent of PyG gcn_norm (add_self_loops=True, normalize=True,
    flow source->target, edge_weight=None):
      - off-diagonal entries count parallel edges (duplicates sum, as in
        scatter-based message passing),
      - every node ends with exactly one self-loop of weight 1
        (add_remaining_self_loops semantics: existing / duplicate self-loops
        collapse to weight 1),
      - A_hat[i, j] = d^-1/2[i] * A[i, j] * d^-1/2[j] with d the in-degree
        (row-sum) including the self-loop, so aggregation is out = A_hat @ x.
    """
    src, dst = edge_index[0], edge_index[1]
    adj = jnp.zeros((num_nodes, num_nodes), jnp.float32)
    adj = adj.at[dst, src].add(1.0)                    # message src -> dst
    idx = jnp.arange(num_nodes)
    adj = adj.at[idx, idx].set(1.0)                    # exactly one self-loop
    deg = adj.sum(axis=1)
    dinv = jnp.where(deg > 0, 1.0 / jnp.sqrt(deg), 0.0)
    return dinv[:, None] * adj * dinv[None, :]


def vgae_conv_forward(x, edge_index, params, *, tile=512,
                      stream_dtype=jnp.bfloat16):
    """Forward pass of VGAEconv.  Returns (mu, sigma), each [N, dim].

    stream_dtype: dtype used for the HBM-streamed operands (A_hat, xw, hz).
    bfloat16 halves traffic on the memory-bound A stream (f32 accumulation is
    kept on the MXU); pass jnp.float32 for exact parity with the reference.
    """
    n, f = x.shape
    hidden = params["w1"].shape[1]
    dim = params["wm"].shape[1]

    # Fuse mean/var heads: one [hidden, 2*dim] weight -> one lane-dense output.
    w_heads = jnp.concatenate([params["wm"], params["wv"]], axis=1)
    b_heads = jnp.concatenate([params["bm"], params["bv"]], axis=1)

    # ---- tile selection ----------------------------------------------------
    tile = max(_LANES, (tile // _LANES) * _LANES)
    n128 = _round_up(n, _LANES)
    tk = min(tile, n128)
    tm = tk
    # v7x megacore: keep >= 2 row tiles on the "parallel" axis when the graph
    # spans more than one 128-row tile, so both TensorCores get work.
    if n128 >= 2 * _LANES and _round_up(n, tm) // tm < 2:
        half = max(_LANES, (tk // 2 // _LANES) * _LANES)
        if tk % half == 0:
            tm = half
    n_pad = _round_up(n, tk)          # tk is a multiple of tm

    f_pad = _round_up(f, _LANES)
    h_pad = _round_up(hidden, _LANES)
    c_pad = _round_up(2 * dim, _LANES)

    # TODO(synk): for genuinely large sparse graphs, replace the dense A_hat
    # with a scalar-prefetched SpMM (neighbor-list gather via make_async_copy).
    a_hat = gcn_normalized_adjacency(edge_index, n)

    # Zero padding is exact: padded node rows do pick up h = relu(0 + b1) in
    # layer 1, but A_hat's padded *columns* are zero, so padded rows never
    # contribute to any real output row; padded feature/head columns stay 0.
    a_pad = _pad2(a_hat, n_pad, n_pad).astype(stream_dtype)
    x_pad = _pad2(x, n_pad, f_pad)
    w1_pad = _pad2(params["w1"], f_pad, h_pad)
    b1_pad = _pad2(params["b1"], 1, h_pad)
    wh_pad = _pad2(w_heads, h_pad, c_pad)
    bh_pad = _pad2(b_heads, 1, c_pad)

    # 1) feature projection (done once; tiny relative to the A streams).
    xw = _project(x_pad, w1_pad, tm, stream_dtype)                 # [N_pad, h_pad]
    # 2) hz = relu(A @ xw + b1) @ [Wm | Wv]   (aggregation 1 + fused heads)
    hz = _aggregate(a_pad, xw, b1_pad, wh_pad, tm=tm, tk=tk,
                    out_dtype=stream_dtype)                        # [N_pad, c_pad]
    # 3) out = A @ hz + [bm | bv]             (aggregation 2, f32 output)
    out = _aggregate(a_pad, hz, bh_pad, None, tm=tm, tk=tk)        # [N_pad, c_pad]

    mu = out[:n, :dim]
    sigma = out[:n, dim:2 * dim]
    return mu, sigma


def init_params(key, num_node_features, hidden_dim, dim):
    """Deterministic glorot-uniform-style init matching GCNConv parameter shapes."""
    ks = jax.random.split(key, 3)

    def glorot(k, fan_in, fan_out):
        limit = jnp.sqrt(6.0 / (fan_in + fan_out))
        return jax.random.uniform(k, (fan_in, fan_out), jnp.float32, -limit, limit)

    return {
        # conv1: GCNConv(num_node_features -> hidden_dim), bias=True
        "w1": glorot(ks[0], num_node_features, hidden_dim),
        "b1": jnp.zeros((1, hidden_dim), jnp.float32),
        # mean_conv2: GCNConv(hidden_dim -> dim)
        "wm": glorot(ks[1], hidden_dim, dim),
        "bm": jnp.zeros((1, dim), jnp.float32),
        # var_conv2: GCNConv(hidden_dim -> dim)
        "wv": glorot(ks[2], hidden_dim, dim),
        "bv": jnp.zeros((1, dim), jnp.float32),
    }


if __name__ == "__main__":
    num_nodes = 64
    num_node_features = 16
    hidden_dim = 32
    dim = 8
    num_edges = 256

    key = jax.random.PRNGKey(0)
    k_x, k_src, k_dst, k_p = jax.random.split(key, 4)

    x = jax.random.normal(k_x, (num_nodes, num_node_features), jnp.float32)
    edge_index = jnp.stack([
        jax.random.randint(k_src, (num_edges,), 0, num_nodes, dtype=jnp.int32),
        jax.random.randint(k_dst, (num_edges,), 0, num_nodes, dtype=jnp.int32),
    ])

    params = init_params(k_p, num_node_features, hidden_dim, dim)

    # Default (bf16-streamed) path.
    mu, sigma = vgae_conv_forward(x, edge_index, params)
    jax.block_until_ready((mu, sigma))

    # Exact-parity (f32-streamed) path.
    mu32, sg32 = vgae_conv_forward(x, edge_index, params,
                                   stream_dtype=jnp.float32)
    jax.block_until_ready((mu32, sg32))

    # Pure-JAX reference (same math, no tiling/padding).
    a_ref = gcn_normalized_adjacency(edge_index, num_nodes)
    h_ref = jnp.maximum(a_ref @ (x @ params["w1"]) + params["b1"], 0.0)
    mu_ref = a_ref @ (h_ref @ params["wm"]) + params["bm"]
    sg_ref = a_ref @ (h_ref @ params["wv"]) + params["bv"]

    assert mu.shape == (num_nodes, dim) and sigma.shape == (num_nodes, dim)
    assert jnp.all(jnp.isfinite(mu)) and jnp.all(jnp.isfinite(sigma))
    # f32 streaming: tight parity with the reference.
    assert jnp.allclose(mu32, mu_ref, atol=1e-4, rtol=1e-4)
    assert jnp.allclose(sg32, sg_ref, atol=1e-4, rtol=1e-4)
    # bf16 streaming (f32 accumulation): loosened tolerance.
    assert jnp.allclose(mu, mu_ref, atol=5e-2, rtol=5e-2)
    assert jnp.allclose(sigma, sg_ref, atol=5e-2, rtol=5e-2)
    print("KERNEL_OK")
</pallas_src>

<mosaic_0001>
module attributes {stable_mosaic.version = 11 : i64} {
  func.func @_proj_kernel(%arg0: i32, %arg1: memref<128x128xf32, #tpu.memory_space<vmem>>, %arg2: memref<128x128xf32, #tpu.memory_space<vmem>>, %arg3: memref<128x128xbf16, #tpu.memory_space<vmem>>) attributes {dimension_semantics = [#tpu.dimension_semantics<parallel>], iteration_bounds = array<i64: 1>, scalar_prefetch = 0 : i64, scratch_operands = 0 : i64, tpu.core_type = #tpu.core_type<tc>, window_params = [{transform_indices = @transform_0, window_bounds = array<i64: 128, 128>}, {pipeline_mode = #tpu.pipeline_mode<synchronous>, transform_indices = @transform_1, window_bounds = array<i64: 128, 128>}, {transform_indices = @transform_2, window_bounds = array<i64: 128, 128>}]} {
    %c0 = arith.constant 0 : index
    %c0_0 = arith.constant 0 : index
    %0 = vector.load %arg1[%c0, %c0_0] : memref<128x128xf32, #tpu.memory_space<vmem>>, vector<128x128xf32>
    %c0_1 = arith.constant 0 : index
    %c0_2 = arith.constant 0 : index
    %1 = vector.load %arg2[%c0_1, %c0_2] : memref<128x128xf32, #tpu.memory_space<vmem>>, vector<128x128xf32>
    %cst = arith.constant dense<0.000000e+00> : vector<128x128xf32>
    %2 = tpu.matmul %0, %1, %cst {dimension_numbers = #tpu.dot_dimension_numbers<[1], [0], [0], [1], [0, 0, 1, 1], [], []>} : vector<128x128xf32>, vector<128x128xf32>, vector<128x128xf32> -> vector<128x128xf32>
    %3 = arith.truncf %2 : vector<128x128xf32> to vector<128x128xbf16>
    %c0_3 = arith.constant 0 : index
    %c0_4 = arith.constant 0 : index
    %4 = vector.load %arg3[%c0_3, %c0_4] : memref<128x128xbf16, #tpu.memory_space<vmem>>, vector<128x128xbf16>
    tpu.vector_store %arg3[%c0_3, %c0_4], %3 {strides = array<i32>} : memref<128x128xbf16, #tpu.memory_space<vmem>>, vector<128x128xbf16>,
    return
  }
  func.func @transform_0(%arg0: i32) -> (i32, i32) {
    %c0_i32 = arith.constant 0 : i32
    %c0_i32_0 = arith.constant 0 : i32
    return %arg0, %c0_i32 : i32, i32
  }
  func.func @transform_1(%arg0: i32) -> (i32, i32) {
    %c0_i32 = arith.constant 0 : i32
    %c0_i32_0 = arith.constant 0 : i32
    %c0_i32_1 = arith.constant 0 : i32
    return %c0_i32, %c0_i32_0 : i32, i32
  }
  func.func @transform_2(%arg0: i32) -> (i32, i32) {
    %c0_i32 = arith.constant 0 : i32
    %c0_i32_0 = arith.constant 0 : i32
    return %arg0, %c0_i32 : i32, i32
  }
}

</mosaic_0001>

<bundles_post_ra>
// kernel: tpu_custom_call.1
= control target key start
LH: loop header
LB: loop body
LE: loop exit
PB: predicated region body
PF: predicated region fallthrough
CT: control target
= control target key end

     0   :  { %7 = vsyncpa [#allocation3], 0  ;;  %s618_s0 = inlined_call_operand.hbm [shape: f32[128,128], index: 0, kind: input, shape index: {}]   ;;  %s619_s1 = inlined_call_operand.hbm [shape: f32[128,128], index: 1, kind: input, shape index: {}]   ;;  %s620_s2 = inlined_call_operand.hbm [shape: bf16[128,128], index: 2, kind: output, shape index: {}]  }
   0x1   :  { %8 = vsyncpa [#allocation6], 0 }
   0x2   :  { %9 = vsyncpa [#allocation4], 0  ;;  %s587_s9 = smov [#allocation2]  }
   0x3   :  { %s15_s10 = sshll.u32 %s587_s9, 4  ;;  %s16_s10 = int_to_ptr.vmem [resolvable:$true] %s15_s10 }
   0x4   :  { %s529_s11 = scalar_lea.vmem %s16_s10, 2048  ;;  %p534_p1 = scmp.lt.s32.totalorder %s16_s10, %s16_s10 }
   0x5   :  { %p530_p0 = scmp.ne.s32.totalorder %s16_s10, %s529_s11  ;;  %p535_p2 = scmp.lt.s32.totalorder %s529_s11, %s529_s11 }
   0x7   :  { %p536_p3 = por %p535_p2, %p534_p1 }
   0x9   :  { %p537_p4 = pnand %p536_p3, %p530_p0 }
   0xb   :  { %540 = shalt.err (!%p537_p4)
}
   0xc   :  { %s588_s12 = smov 128   ;;  %s589_s13 = smov 8  }
   0xd   :  { %21 = dma.hbm_to_vmem [thread:$0]  %s618_s0, 2048, %s16_s10, [#allocation3], %s588_s12, %s588_s12, %s589_s13  }
   0xe   :  { %s590_s16 = smov [#allocation5]  }
   0xf   :  { %s27_s17 = sshll.u32 %s590_s16, 4  ;;  %s28_s17 = int_to_ptr.vmem [resolvable:$true] %s27_s17 }
  0x10   :  { %s549_s18 = scalar_lea.vmem %s28_s17, 2048  ;;  %p554_p6 = scmp.lt.s32.totalorder %s28_s17, %s28_s17 }
  0x11   :  { %p550_p5 = scmp.ne.s32.totalorder %s28_s17, %s549_s18  ;;  %p555_p7 = scmp.lt.s32.totalorder %s549_s18, %s549_s18 }
  0x13   :  { %p556_p8 = por %p555_p7, %p554_p6 }
  0x15   :  { %p557_p9 = pnand %p556_p8, %p550_p5 }
  0x17   :  { %560 = shalt.err (!%p557_p9)
}
  0x18   :  { %33 = dma.hbm_to_vmem [thread:$0]  %s619_s1, 2048, %s28_s17, [#allocation6], %s588_s12, %s588_s12, %s589_s13  }
  0x19   :  { %581 = dma.done.wait [#allocation3], 2048  }
  0x1a   :  { %582 = vsyncadd [#allocation3], 4294965248 }
  0x1b   :  { %583 = dma.done.wait [#allocation6], 2048  }
  0x1c   :  { %584 = vsyncadd [#allocation6], 4294965248  ;;  %v71_v0 = vld [vmem:[#allocation5 + $0x78] sm:$0xff]  ;;  %v70_v1 = vld [vmem:[#allocation5 + $0x70] sm:$0xff]  ;;  %s591_s0 = smov [#allocation7]  }
  0x1d   :  { %426 = vmatprep.subr.mxu0 %v71_v0  ;;  %482 = vmatprep.subr.mxu1 %v71_v0  ;;  %v69_v2 = vld [vmem:[#allocation5 + $0x68] sm:$0xff]  ;;  %v68_v3 = vld [vmem:[#allocation5 + $0x60] sm:$0xff]  ;;  %v67_v4 = vld [vmem:[#allocation5 + $0x58] sm:$0xff]  ;;  %s302_s1 = sshll.u32 %s591_s0, 4  ;;  %s303_s1 = int_to_ptr.vmem [resolvable:$true] %s302_s1 }
  0x1e   :  { %427 = vmatpush3.msra.mxu0 %v71_v0  ;;  %498 = vmatpush3.msra.mxu1 %v71_v0  ;;  %v66_v5 = vld [vmem:[#allocation5 + $0x50] sm:$0xff]  ;;  %v65_v6 = vld [vmem:[#allocation5 + $0x48] sm:$0xff]  ;;  %v64_v7 = vld [vmem:[#allocation5 + $0x40] sm:$0xff]  ;;  %s561_s21 = scalar_lea.vmem %s303_s1, 1024  ;;  %p566_p11 = scmp.lt.s32.totalorder %s303_s1, %s303_s1 }
  0x1f   :  { %428 = vmatprep.subr.mxu0 %v70_v1  ;;  %483 = vmatprep.subr.mxu1 %v70_v1  ;;  %v63_v8 = vld [vmem:[#allocation5 + $0x38] sm:$0xff]  ;;  %v62_v9 = vld [vmem:[#allocation5 + $0x30] sm:$0xff]  ;;  %v61_v10 = vld [vmem:[#allocation5 + $0x28] sm:$0xff]  ;;  %p562_p10 = scmp.ne.s32.totalorder %s303_s1, %s561_s21  ;;  %p567_p12 = scmp.lt.s32.totalorder %s561_s21, %s561_s21 }
  0x20   :  { %429 = vmatpush3.msra.mxu0 %v70_v1  ;;  %499 = vmatpush3.msra.mxu1 %v70_v1  ;;  %v60_v11 = vld [vmem:[#allocation5 + $0x20] sm:$0xff]  ;;  %v59_v12 = vld [vmem:[#allocation5 + $0x18] sm:$0xff]  ;;  %v58_v13 = vld [vmem:[#allocation5 + $0x10] sm:$0xff] }
  0x21   :  { %430 = vmatprep.subr.mxu0 %v69_v2  ;;  %484 = vmatprep.subr.mxu1 %v69_v2  ;;  %v57_v14 = vld [vmem:[#allocation5 + $0x8] sm:$0xff]  ;;  %v56_v15 = vld [vmem:[#allocation5] sm:$0xff]  ;;  %v42_v20 = vld [vmem:[#allocation2 + $0x10] sm:$0xff]  ;;  %p568_p13 = por %p567_p12, %p566_p11 }
  0x22   :  { %431 = vmatpush3.msra.mxu0 %v69_v2  ;;  %500 = vmatpush3.msra.mxu1 %v69_v2  ;;  %v40_v16 = vld [vmem:[#allocation2] sm:$0xff]  ;;  %v41_v18 = vld [vmem:[#allocation2 + $0x8] sm:$0xff]  ;;  %v50_v21 = vld [vmem:[#allocation2 + $0x50] sm:$0xff] }
  0x23   :  { %432 = vmatprep.subr.mxu0 %v68_v3  ;;  %485 = vmatprep.subr.mxu1 %v68_v3  ;;  %v48_v17 = vld [vmem:[#allocation2 + $0x40] sm:$0xff]  ;;  %v49_v19 = vld [vmem:[#allocation2 + $0x48] sm:$0xff]  ;;  %v43_v22 = vld [vmem:[#allocation2 + $0x18] sm:$0xff]  ;;  %p569_p0 = pnand %p568_p13, %p562_p10 }
  0x24   :  { %433 = vmatpush3.msra.mxu0 %v68_v3  ;;  %501 = vmatpush3.msra.mxu1 %v68_v3  ;;  %v51_v23 = vld [vmem:[#allocation2 + $0x58] sm:$0xff]  ;;  %v44_v24 = vld [vmem:[#allocation2 + $0x20] sm:$0xff]  ;;  %v45_v26 = vld [vmem:[#allocation2 + $0x28] sm:$0xff] }
  0x25   :  { %434 = vmatprep.subr.mxu0 %v67_v4  ;;  %486 = vmatprep.subr.mxu1 %v67_v4  ;;  %v52_v25 = vld [vmem:[#allocation2 + $0x60] sm:$0xff]  ;;  %v53_v27 = vld [vmem:[#allocation2 + $0x68] sm:$0xff]  ;;  %v46_v28 = vld [vmem:[#allocation2 + $0x30] sm:$0xff] }
  0x26   :  { %435 = vmatpush3.msra.mxu0 %v67_v4  ;;  %502 = vmatpush3.msra.mxu1 %v67_v4  ;;  %v54_v29 = vld [vmem:[#allocation2 + $0x70] sm:$0xff]  ;;  %v47_v30 = vld [vmem:[#allocation2 + $0x38] sm:$0xff] }
  0x27   :  { %436 = vmatprep.subr.mxu0 %v66_v5  ;;  %487 = vmatprep.subr.mxu1 %v66_v5  ;;  %v55_v31 = vld [vmem:[#allocation2 + $0x78] sm:$0xff] }
  0x28   :  { %437 = vmatpush3.msra.mxu0 %v66_v5  ;;  %503 = vmatpush3.msra.mxu1 %v66_v5 }
  0x29   :  { %438 = vmatprep.subr.mxu0 %v65_v6  ;;  %488 = vmatprep.subr.mxu1 %v65_v6 }
  0x2a   :  { %439 = vmatpush3.msra.mxu0 %v65_v6  ;;  %504 = vmatpush3.msra.mxu1 %v65_v6 }
  0x2b   :  { %440 = vmatprep.subr.mxu0 %v64_v7  ;;  %489 = vmatprep.subr.mxu1 %v64_v7 }
  0x2c   :  { %441 = vmatpush3.msra.mxu0 %v64_v7  ;;  %505 = vmatpush3.msra.mxu1 %v64_v7 }
  0x2d   :  { %442 = vmatprep.subr.mxu0 %v63_v8  ;;  %490 = vmatprep.subr.mxu1 %v63_v8 }
  0x2e   :  { %443 = vmatpush3.msra.mxu0 %v63_v8  ;;  %506 = vmatpush3.msra.mxu1 %v63_v8 }
  0x2f   :  { %444 = vmatprep.subr.mxu0 %v62_v9  ;;  %491 = vmatprep.subr.mxu1 %v62_v9 }
  0x30   :  { %445 = vmatpush3.msra.mxu0 %v62_v9  ;;  %507 = vmatpush3.msra.mxu1 %v62_v9 }
  0x31   :  { %446 = vmatprep.subr.mxu0 %v61_v10  ;;  %492 = vmatprep.subr.mxu1 %v61_v10 }
  0x32   :  { %447 = vmatpush3.msra.mxu0 %v61_v10  ;;  %508 = vmatpush3.msra.mxu1 %v61_v10 }
  0x33   :  { %448 = vmatprep.subr.mxu0 %v60_v11  ;;  %493 = vmatprep.subr.mxu1 %v60_v11 }
  0x34   :  { %449 = vmatpush3.msra.mxu0 %v60_v11  ;;  %509 = vmatpush3.msra.mxu1 %v60_v11 }
  0x35   :  { %450 = vmatprep.subr.mxu0 %v59_v12  ;;  %494 = vmatprep.subr.mxu1 %v59_v12 }
  0x36   :  { %451 = vmatpush3.msra.mxu0 %v59_v12  ;;  %510 = vmatpush3.msra.mxu1 %v59_v12 }
  0x37   :  { %452 = vmatprep.subr.mxu0 %v58_v13  ;;  %495 = vmatprep.subr.mxu1 %v58_v13 }
  0x38   :  { %453 = vmatpush3.msra.mxu0 %v58_v13  ;;  %511 = vmatpush3.msra.mxu1 %v58_v13 }
  0x39   :  { %454 = vmatprep.subr.mxu0 %v57_v14  ;;  %496 = vmatprep.subr.mxu1 %v57_v14 }
  0x3a   :  { %455 = vmatpush3.msra.mxu0 %v57_v14  ;;  %512 = vmatpush3.msra.mxu1 %v57_v14 }
  0x3b   :  { %456 = vmatprep.subr.mxu0 %v56_v15  ;;  %497 = vmatprep.subr.mxu1 %v56_v15 }
  0x3c   :  { %457 = vmatpush3.msra.mxu0 %v56_v15  ;;  %513 = vmatpush3.msra.mxu1 %v56_v15 }
  0x3d   :  { %458 = vmatprep.mubr.f32.mxu0 %v40_v16  ;;  %470 = vmatprep.mubr.f32.mxu1 %v48_v17 }
  0x3e   :  { %459 = vmatmul.mubr.f32.vlgmr.msra.gmra.mxu0 %v41_v18  ;;  %471 = vmatmul.mubr.f32.vlgmr.msra.gmra.mxu1 %v49_v19 }
  0x3f   :  { %461 = vmatprep.mubr.f32.mxu0 %v42_v20  ;;  %473 = vmatprep.mubr.f32.mxu1 %v50_v21 }
  0x42   :  { %462 = vmatmul.mubr.f32.gmra.mxu0 %v43_v22  ;;  %474 = vmatmul.mubr.f32.gmra.mxu1 %v51_v23 }
  0x43   :  { %464 = vmatprep.mubr.f32.mxu0 %v44_v24  ;;  %476 = vmatprep.mubr.f32.mxu1 %v52_v25 }
  0x46   :  { %465 = vmatmul.mubr.f32.gmra.mxu0 %v45_v26  ;;  %477 = vmatmul.mubr.f32.gmra.mxu1 %v53_v27 }
  0x47   :  { %467 = vmatprep.mubr.f32.mxu0 %v46_v28  ;;  %479 = vmatprep.mubr.f32.mxu1 %v54_v29 }
  0x4a   :  { %468 = vmatmul.mubr.f32.gmra.mxu0 %v47_v30  ;;  %480 = vmatmul.mubr.f32.gmra.mxu1 %v55_v31 }
  0xfe   :  { %v460_v32 = vpop.f32.mrf.mxu0  ;;  %v472_v33 = vpop.f32.mrf.mxu1 }
 0x100   :  { %v138_v34 = vpop.f32.mrf.mxu0  ;;  %v178_v35 = vpop.f32.mrf.mxu1 }
 0x101   :  { %v350_v36 = vpack.c.bf16 %v460_v32, %v138_v34  ;;  %v370_v37 = vpack.c.bf16 %v472_v33, %v178_v35 }
 0x102   :  { %v463_v38 = vpop.f32.mrf.mxu0  ;;  %v475_v39 = vpop.f32.mrf.mxu1 }
 0x103   :  { %351 = vst [vmem:[#allocation7] sm:$0xff] %v350_v36   ;;  %390 = vst [vmem:[#allocation7 + $0x20] sm:$0xff] %v370_v37  }
 0x104   :  { %v148_v40 = vpop.f32.mrf.mxu0  ;;  %v188_v41 = vpop.f32.mrf.mxu1 }
 0x105   :  { %v355_v42 = vpack.c.bf16 %v463_v38, %v148_v40  ;;  %v375_v43 = vpack.c.bf16 %v475_v39, %v188_v41 }
 0x106   :  { %v466_v44 = vpop.f32.mrf.mxu0  ;;  %v478_v45 = vpop.f32.mrf.mxu1 }
 0x107   :  { %387 = vst [vmem:[#allocation7 + $0x8] sm:$0xff] %v355_v42   ;;  %391 = vst [vmem:[#allocation7 + $0x28] sm:$0xff] %v375_v43  }
 0x108   :  { %v158_v46 = vpop.f32.mrf.mxu0  ;;  %v198_v47 = vpop.f32.mrf.mxu1 }
 0x109   :  { %v360_v48 = vpack.c.bf16 %v466_v44, %v158_v46  ;;  %v380_v49 = vpack.c.bf16 %v478_v45, %v198_v47 }
 0x10a   :  { %v469_v50 = vpop.f32.mrf.mxu0  ;;  %v481_v51 = vpop.f32.mrf.mxu1 }
 0x10b   :  { %388 = vst [vmem:[#allocation7 + $0x10] sm:$0xff] %v360_v48   ;;  %392 = vst [vmem:[#allocation7 + $0x30] sm:$0xff] %v380_v49  }
 0x10c   :  { %v168_v52 = vpop.f32.mrf.mxu0  ;;  %v208_v53 = vpop.f32.mrf.mxu1 }
 0x10d   :  { %v365_v54 = vpack.c.bf16 %v469_v50, %v168_v52  ;;  %v385_v55 = vpack.c.bf16 %v481_v51, %v208_v53 }
 0x10f   :  { %389 = vst [vmem:[#allocation7 + $0x18] sm:$0xff] %v365_v54   ;;  %393 = vst [vmem:[#allocation7 + $0x38] sm:$0xff] %v385_v55  }
 0x110   :  { %572 = shalt.err (!%p569_p0)
}
 0x111   :  { %s592_s22 = smov 64   ;;  %s593_s23 = smov 4  }
 0x112   :  { %308 = dma.vmem_to_hbm [thread:$0]  %s303_s1, 1024, %s620_s2, [#allocation4], %s592_s22, %s592_s22, %s593_s23  }
 0x113   :  { %585 = dma.done.wait [#allocation4], 1024  }
 0x114   :  { %586 = vsyncadd [#allocation4], 4294966272 }
 0x115   :  { %312 = vsyncpa [#allocation3], 1 }
 0x116   :  { %313 = vsyncpa [#allocation6], 1 }
 0x117   :  { %314 = vsyncpa [#allocation4], 1 }

</bundles_post_ra>
